<compile_context>
chip_gen: v7x
topology: tpu7x:2x2x1
jax: 0.10.0
libtpu: 0.0.40
codegen_flags: <defaults>
</compile_context>

<pallas_src>
import functools
import math

import jax
import jax.numpy as jnp
from jax.experimental import pallas as pl
from jax.experimental.pallas import tpu as pltpu


def _round_up(a, b):
    return ((a + b - 1) // b) * b


def _cdiv(a, b):
    return (a + b - 1) // b


def _poisson_head_kernel(x_ref, w_ref, b_ref, o_ref, *, op_dtype):
    # x_ref: (TM/G, G*D_in)    packed rows of x
    # w_ref: (G*D_in, G*D_out) block-diagonal weight (each block = W^T)
    # b_ref: (1, G*D_out)      bias tiled G times (kept f32)
    # o_ref: (TM/G, G*D_out)   lane-dense packed rates
    x = x_ref[...]
    if op_dtype is not None:
        x = x.astype(op_dtype)  # e.g. bf16 operands on v5e; f32 accumulation below
    z = jnp.dot(x, w_ref[...], preferred_element_type=jnp.float32)
    z = z + b_ref[...]
    # Numerically-stable softplus: max(z, 0) + log1p(exp(-|z|))
    sp = jnp.maximum(z, 0.0) + jnp.log1p(jnp.exp(-jnp.abs(z)))
    o_ref[...] = (sp + 1e-6).astype(o_ref.dtype)


def make_poisson_head(
    weight,
    bias,
    *,
    out_dtype=jnp.float32,
    operand_dtype=None,           # set to jnp.bfloat16 on v5e if accuracy budget allows
    target_step_bytes=4 << 20,    # HBM traffic per grid step (review: 2-8 MiB)
    vmem_io_budget_bytes=12 << 20,  # double-buffered I/O cap (safe on all gens)
):
    """Builds a jitted forward: x (B, L, D_in) -> rate (B, L, D_out, 1)."""
    weight = jnp.asarray(weight)
    bias = jnp.asarray(bias)
    D_out, D_in = weight.shape

    # Lane-dense packing factor: G logical rows share one stored row so the
    # stored last dim (G * D_out) is a multiple of 128 lanes.
    G = 128 // math.gcd(D_out, 128)
    w_store_dtype = operand_dtype if operand_dtype is not None else weight.dtype
    w_item = jnp.dtype(w_store_dtype).itemsize
    if (G * D_in) * (G * D_out) * w_item > (4 << 20):
        # Block-diagonal weight too big to keep resident: fall back to unpacked
        # (masked-store) output. Still correct, just less store-dense.
        G = 1
    align = 8 * G  # sublane (8) alignment x packing factor, in logical rows

    # --- Hoisted: packed parameters built ONCE (not on the per-call hot path) ---
    #   w_block[g*D_in + k, g'*D_out + o] = delta(g, g') * weight[o, k]
    eye_g = jnp.eye(G, dtype=weight.dtype)
    w_t = jnp.swapaxes(weight, 0, 1)  # (D_in, D_out)
    w_block = (
        (eye_g[:, None, :, None] * w_t[None, :, None, :])
        .reshape(G * D_in, G * D_out)
        .astype(w_store_dtype)
    )
    b_block = jnp.tile(bias.astype(jnp.float32), G).reshape(1, G * D_out)

    out_item = jnp.dtype(out_dtype).itemsize
    kernel = functools.partial(_poisson_head_kernel, op_dtype=operand_dtype)

    def forward(x):
        B, L, d = x.shape
        assert d == D_in, (d, D_in)
        N = B * L
        x_item = jnp.dtype(x.dtype).itemsize

        x2 = x.reshape(N, D_in)  # free row-major collapse
        N_g = N
        if N % G != 0:
            # Rare slow path (full copy of x), only pads < G rows so the packed
            # reshape below stays a free row-major collapse.
            pad = G - (N % G)
            x2 = jnp.pad(x2, ((0, pad), (0, 0)))
            N_g = N + pad
        rows = N_g // G
        x_packed = x2.reshape(rows, G * D_in)  # free

        # ---- tile sizing (in logical rows, multiple of `align`) ----
        bytes_per_row = D_in * x_item + D_out * out_item
        tile = max(align, (target_step_bytes // bytes_per_row) // align * align)
        # VMEM cap: double-buffered input+output blocks must fit the budget.
        tile = min(tile, max(align, (vmem_io_budget_bytes // (2 * bytes_per_row)) // align * align))
        # >= 2 grid steps when the data is big enough -> both TCs used on v7x.
        tile = min(tile, _round_up(_cdiv(N_g, 2), align))
        tile = max(tile, align)

        tile_p = tile // G                     # packed rows per block
        grid = _cdiv(rows, tile_p)             # partial last block handled by Pallas
        # (OOB reads are garbage -> softplus of garbage; OOB writes are masked.)

        in_block_bytes = tile_p * G * D_in * x_item
        out_block_bytes = tile_p * G * D_out * out_item
        param_bytes = w_block.size * w_item + b_block.size * 4
        est_vmem = (
            2 * (in_block_bytes + out_block_bytes)   # double-buffered I/O
            + 2 * param_bytes                        # resident weight/bias
            + 6 * tile_p * G * D_out * 4             # f32 temporaries headroom
            + (2 << 20)                              # slack
        )
        # >=16 MiB so v5e's 16 MiB scoped default never bites; <=40 MiB for v7x.
        vmem_limit = int(min(max(est_vmem, 16 << 20), 40 << 20))

        out_packed = pl.pallas_call(
            kernel,
            out_shape=jax.ShapeDtypeStruct((rows, G * D_out), out_dtype),
            grid_spec=pltpu.PrefetchScalarGridSpec(
                num_scalar_prefetch=0,
                grid=(grid,),
                in_specs=[
                    pl.BlockSpec((tile_p, G * D_in), lambda i: (i, 0)),
                    pl.BlockSpec((G * D_in, G * D_out), lambda i: (0, 0)),
                    pl.BlockSpec((1, G * D_out), lambda i: (0, 0)),
                ],
                out_specs=pl.BlockSpec((tile_p, G * D_out), lambda i: (i, 0)),
            ),
            compiler_params=pltpu.CompilerParams(
                dimension_semantics=("parallel",),
                vmem_limit_bytes=vmem_limit,
            ),
            cost_estimate=pl.CostEstimate(
                flops=2 * N_g * G * D_in * D_out,        # includes the Gx MXU waste
                transcendentals=2 * N_g * D_out,         # exp + log1p per output
                bytes_accessed=N_g * bytes_per_row + param_bytes,
            ),
        )(x_packed, w_block, b_block)

        # Packed layout is row-major identical to (N_g, D_out): reshape is free.
        out = out_packed.reshape(N_g, D_out)
        if N_g != N:
            out = out[:N]  # only on the rare pad path
        return out.reshape(B, L, D_out, 1)

    return jax.jit(forward)

# TODO(synk): __get_dist__ / sample (torch.distributions.Poisson) are host-side
# distribution-object utilities, not kernel work; only forward() is implemented.


if __name__ == "__main__":
    key = jax.random.PRNGKey(0)
    k_x1, k_x2, k_x3, k_w, k_b = jax.random.split(key, 5)

    input_dim, output_dim = 32, 16

    # Deterministic PyTorch-Linear-style init: U(-1/sqrt(in), 1/sqrt(in))
    bound = 1.0 / jnp.sqrt(jnp.float32(input_dim))
    weight = jax.random.uniform(k_w, (output_dim, input_dim), jnp.float32, -bound, bound)
    bias = jax.random.uniform(k_b, (output_dim,), jnp.float32, -bound, bound)

    head = make_poisson_head(weight, bias)

    def reference(x):
        z = jnp.einsum("bld,od->blo", x, weight) + bias
        return (jnp.logaddexp(z, 0.0) + 1e-6)[..., None]  # softplus + floor

    # 1) Spec-sized case (B=2, L=8): single block larger than the packed array.
    x1 = jax.random.normal(k_x1, (2, 8, input_dim), dtype=jnp.float32)
    r1 = jax.block_until_ready(head(x1))
    assert r1.shape == (2, 8, output_dim, 1), r1.shape
    assert jnp.allclose(r1, reference(x1), atol=1e-5, rtol=1e-5), float(
        jnp.max(jnp.abs(r1 - reference(x1)))
    )

    # 2) Multi-step grid with a partial last block (no pad, no output slice).
    x2 = jax.random.normal(k_x2, (2, 100, input_dim), dtype=jnp.float32)
    r2 = jax.block_until_ready(head(x2))
    assert r2.shape == (2, 100, output_dim, 1), r2.shape
    assert jnp.allclose(r2, reference(x2), atol=1e-5, rtol=1e-5), float(
        jnp.max(jnp.abs(r2 - reference(x2)))
    )

    # 3) N not a multiple of the packing factor G (rare pad slow path).
    x3 = jax.random.normal(k_x3, (3, 7, input_dim), dtype=jnp.float32)
    r3 = jax.block_until_ready(head(x3))
    assert r3.shape == (3, 7, output_dim, 1), r3.shape
    assert jnp.allclose(r3, reference(x3), atol=1e-5, rtol=1e-5), float(
        jnp.max(jnp.abs(r3 - reference(x3)))
    )

    print("KERNEL_OK")
</pallas_src>

<mosaic_0001>
module attributes {stable_mosaic.version = 11 : i64} {
  func.func @_poisson_head_kernel(%arg0: i32, %arg1: memref<8x256xf32, #tpu.memory_space<vmem>>, %arg2: memref<256x128xf32, #tpu.memory_space<vmem>>, %arg3: memref<1x128xf32, #tpu.memory_space<vmem>>, %arg4: memref<8x128xf32, #tpu.memory_space<vmem>>) attributes {dimension_semantics = [#tpu.dimension_semantics<parallel>], iteration_bounds = array<i64: 1>, scalar_prefetch = 0 : i64, scratch_operands = 0 : i64, tpu.core_type = #tpu.core_type<tc>, window_params = [{transform_indices = @transform_0, window_bounds = array<i64: 8, 256>}, {pipeline_mode = #tpu.pipeline_mode<synchronous>, transform_indices = @transform_1, window_bounds = array<i64: 256, 128>}, {pipeline_mode = #tpu.pipeline_mode<synchronous>, transform_indices = @transform_2, window_bounds = array<i64: 1, 128>}, {transform_indices = @transform_3, window_bounds = array<i64: 8, 128>}]} {
    %c0 = arith.constant 0 : index
    %c0_0 = arith.constant 0 : index
    %0 = vector.load %arg1[%c0, %c0_0] : memref<8x256xf32, #tpu.memory_space<vmem>>, vector<8x256xf32>
    %c0_1 = arith.constant 0 : index
    %c0_2 = arith.constant 0 : index
    %1 = vector.load %arg2[%c0_1, %c0_2] : memref<256x128xf32, #tpu.memory_space<vmem>>, vector<256x128xf32>
    %cst = arith.constant dense<0.000000e+00> : vector<8x128xf32>
    %2 = tpu.matmul %0, %1, %cst {dimension_numbers = #tpu.dot_dimension_numbers<[1], [0], [0], [1], [0, 0, 1, 1], [], []>} : vector<8x256xf32>, vector<256x128xf32>, vector<8x128xf32> -> vector<8x128xf32>
    %c0_3 = arith.constant 0 : index
    %c0_4 = arith.constant 0 : index
    %3 = vector.load %arg3[%c0_3, %c0_4] : memref<1x128xf32, #tpu.memory_space<vmem>>, vector<1x128xf32>
    %4 = vector.broadcast %3 : vector<1x128xf32> to vector<8x128xf32>
    %5 = arith.addf %2, %4 : vector<8x128xf32>
    %cst_5 = arith.constant 0.000000e+00 : f32
    %6 = vector.broadcast %cst_5 : f32 to vector<8x128xf32>
    %7 = arith.maximumf %5, %6 : vector<8x128xf32>
    %8 = math.absf %5 : vector<8x128xf32>
    %cst_6 = arith.constant 0.000000e+00 : f32
    %9 = vector.broadcast %cst_6 : f32 to vector<8x128xf32>
    %10 = arith.subf %9, %8 : vector<8x128xf32>
    %11 = math.exp %10 : vector<8x128xf32>
    %12 = math.log1p %11 : vector<8x128xf32>
    %13 = arith.addf %7, %12 : vector<8x128xf32>
    %cst_7 = arith.constant 9.99999997E-7 : f32
    %14 = vector.broadcast %cst_7 : f32 to vector<8x128xf32>
    %15 = arith.addf %13, %14 : vector<8x128xf32>
    %c0_8 = arith.constant 0 : index
    %c0_9 = arith.constant 0 : index
    %16 = vector.load %arg4[%c0_8, %c0_9] : memref<8x128xf32, #tpu.memory_space<vmem>>, vector<8x128xf32>
    tpu.vector_store %arg4[%c0_8, %c0_9], %15 {strides = array<i32>} : memref<8x128xf32, #tpu.memory_space<vmem>>, vector<8x128xf32>,
    return
  }
  func.func @transform_0(%arg0: i32) -> (i32, i32) {
    %c0_i32 = arith.constant 0 : i32
    %c0_i32_0 = arith.constant 0 : i32
    return %arg0, %c0_i32 : i32, i32
  }
  func.func @transform_1(%arg0: i32) -> (i32, i32) {
    %c0_i32 = arith.constant 0 : i32
    %c0_i32_0 = arith.constant 0 : i32
    %c0_i32_1 = arith.constant 0 : i32
    return %c0_i32, %c0_i32_0 : i32, i32
  }
  func.func @transform_2(%arg0: i32) -> (i32, i32) {
    %c0_i32 = arith.constant 0 : i32
    %c0_i32_0 = arith.constant 0 : i32
    %c0_i32_1 = arith.constant 0 : i32
    return %c0_i32, %c0_i32_0 : i32, i32
  }
  func.func @transform_3(%arg0: i32) -> (i32, i32) {
    %c0_i32 = arith.constant 0 : i32
    %c0_i32_0 = arith.constant 0 : i32
    return %arg0, %c0_i32 : i32, i32
  }
}

</mosaic_0001>

<bundles_post_ra>
// kernel: forward.1
= control target key start
LH: loop header
LB: loop body
LE: loop exit
PB: predicated region body
PF: predicated region fallthrough
CT: control target
= control target key end

     0   :  { %8 = vsyncpa [#allocation3], 0  ;;  %s326_s12 = smov [#allocation2]   ;;  %s373_s0 = inlined_call_operand.vmem [shape: f32[2,256], index: 0, kind: input, shape index: {}]   ;;  %s374_s1 = inlined_call_operand.hbm [shape: f32[256,128], index: 1, kind: input, shape index: {}]   ;;  %s375_s2 = inlined_call_operand.vmem [shape: f32[1,128], index: 2, kind: input, shape index: {}]   ;;  %s376_s3 = inlined_call_operand.vmem [shape: f32[2,128], index: 3, kind: output, shape index: {}]  }
   0x1   :  { %s16_s13 = sshll.u32 %s326_s12, 4  ;;  %s302_s16 = scalar_lea.hbm %s374_s1, 4096  ;;  %s17_s13 = int_to_ptr.vmem [resolvable:$true] %s16_s13 }
   0x2   :  { %p303_p0 = scmp.ne.s32.totalorder %s374_s1, %s302_s16  ;;  %p306_p1 = scmp.lt.u32.totalorder %s302_s16, %s374_s1 }
   0x4   :  { %p308_p2 = pnand %p306_p1, %p303_p0 }
   0x6   :  { %311 = shalt.err (!%p308_p2)
}
   0x7   :  { %s312_s21 = scalar_lea.vmem %s17_s13, 4096  ;;  %p317_p4 = scmp.lt.s32.totalorder %s17_s13, %s17_s13 }
   0x8   :  { %p313_p3 = scmp.ne.s32.totalorder %s17_s13, %s312_s21  ;;  %p318_p5 = scmp.lt.s32.totalorder %s312_s21, %s312_s21 }
   0xa   :  { %p319_p6 = por %p318_p5, %p317_p4 }
   0xc   :  { %p320_p7 = pnand %p319_p6, %p313_p3 }
   0xe   :  { %323 = shalt.err (!%p320_p7)
}
   0xf   :  { %s327_s22 = smov 128   ;;  %s328_s23 = smov 8  }
  0x10   :  { %22 = dma.hbm_to_vmem [thread:$0]  %s374_s1, 4096, %s17_s13, [#allocation3], %s327_s22, %s327_s22, %s328_s23  }
  0x11   :  { %324 = dma.done.wait [#allocation3], 4096  }
  0x12   :  { %325 = vsyncadd [#allocation3], 4294963200  ;;  %v48_v0 = vld [vmem:[#allocation2 + $0x80] sm:$0xff]  ;;  %v49_v1 = vld [vmem:[#allocation2 + $0x88] sm:$0xff] }
  0x13   :  { %v32_v2 = vld [vmem:[#allocation2] sm:$0xff]  ;;  %v258_v3 = vpack.c.bf16 %v49_v1, %v48_v0  ;;  %v33_v4 = vld [vmem:[#allocation2 + $0x8] sm:$0xff]  ;;  %v50_v5 = vld [vmem:[#allocation2 + $0x90] sm:$0xff] }
  0x14   :  { %v51_v6 = vld [vmem:[#allocation2 + $0x98] sm:$0xff]  ;;  %v260_v7 = vpack.c.bf16 %v33_v4, %v32_v2  ;;  %v34_v9 = vld [vmem:[#allocation2 + $0x10] sm:$0xff]  ;;  %v52_v11 = vld [vmem:[#allocation2 + $0xa0] sm:$0xff] }
  0x15   :  { %v262_v8 = vpack.c.bf16 %v51_v6, %v50_v5  ;;  %v35_v10 = vld [vmem:[#allocation2 + $0x18] sm:$0xff]  ;;  %259 = vmatprep.subr.bf16.mxu0 %v258_v3  ;;  %v53_v12 = vld [vmem:[#allocation2 + $0xa8] sm:$0xff]  ;;  %v36_v15 = vld [vmem:[#allocation2 + $0x20] sm:$0xff] }
  0x16   :  { %261 = vmatpush3.bf16.msra.mxu0 %v260_v7  ;;  %v264_v13 = vpack.c.bf16 %v35_v10, %v34_v9  ;;  %v266_v14 = vpack.c.bf16 %v53_v12, %v52_v11  ;;  %v37_v16 = vld [vmem:[#allocation2 + $0x28] sm:$0xff]  ;;  %v54_v17 = vld [vmem:[#allocation2 + $0xb0] sm:$0xff]  ;;  %v55_v18 = vld [vmem:[#allocation2 + $0xb8] sm:$0xff] }
  0x17   :  { %263 = vmatprep.subr.bf16.mxu0 %v262_v8  ;;  %v268_v19 = vpack.c.bf16 %v37_v16, %v36_v15  ;;  %v270_v20 = vpack.c.bf16 %v55_v18, %v54_v17  ;;  %v38_v21 = vld [vmem:[#allocation2 + $0x30] sm:$0xff]  ;;  %v39_v22 = vld [vmem:[#allocation2 + $0x38] sm:$0xff]  ;;  %v56_v23 = vld [vmem:[#allocation2 + $0xc0] sm:$0xff] }
  0x18   :  { %v57_v24 = vld [vmem:[#allocation2 + $0xc8] sm:$0xff]  ;;  %v272_v25 = vpack.c.bf16 %v39_v22, %v38_v21  ;;  %v300_v26 = vld.sshfl [vmem:[%s373_s0] sm:$0xff pattern:$0x76325410]  ;;  %v58_v31 = vld [vmem:[#allocation2 + $0xd0] sm:$0xff] }
  0x19   :  { %v301_v27 = vld.sshfl [vmem:[%s373_s0 + $0x8] sm:$0xff pattern:$0x76325410]  ;;  %v274_v28 = vpack.c.bf16 %v57_v24, %v56_v23  ;;  %v40_v29 = vld [vmem:[#allocation2 + $0x40] sm:$0xff]  ;;  %v59_v32 = vld [vmem:[#allocation2 + $0xd8] sm:$0xff] }
  0x1a   :  { %265 = vmatpush3.bf16.msra.mxu0 %v264_v13  ;;  %v41_v30 = vld [vmem:[#allocation2 + $0x48] sm:$0xff]  ;;  %v92_v34 = vcombine.high %v300_v26, %v301_v27  ;;  %v278_v35 = vpack.c.bf16 %v59_v32, %v58_v31  ;;  %v42_v36 = vld [vmem:[#allocation2 + $0x50] sm:$0xff]  ;;  %v43_v37 = vld [vmem:[#allocation2 + $0x58] sm:$0xff]  ;;  %v91_v51 = vcombine.low %v300_v26, %v301_v27 }
  0x1b   :  { %267 = vmatprep.subr.bf16.mxu0 %v266_v14  ;;  %v276_v33 = vpack.c.bf16 %v41_v30, %v40_v29  ;;  %v60_v38 = vld [vmem:[#allocation2 + $0xe0] sm:$0xff]  ;;  %v61_v39 = vld [vmem:[#allocation2 + $0xe8] sm:$0xff]  ;;  %v280_v40 = vpack.c.bf16 %v43_v37, %v42_v36  ;;  %v62_v44 = vld [vmem:[#allocation2 + $0xf0] sm:$0xff] }
  0x1c   :  { %159 = vmatprep.mubr.f32.mxu0 %v92_v34  ;;  %v282_v41 = vpack.c.bf16 %v61_v39, %v60_v38  ;;  %v44_v42 = vld [vmem:[#allocation2 + $0x60] sm:$0xff]  ;;  %v45_v43 = vld [vmem:[#allocation2 + $0x68] sm:$0xff]  ;;  %v63_v45 = vld [vmem:[#allocation2 + $0xf8] sm:$0xff] }
  0x1d   :  { %v284_v46 = vpack.c.bf16 %v45_v43, %v44_v42  ;;  %v286_v47 = vpack.c.bf16 %v63_v45, %v62_v44  ;;  %v46_v48 = vld [vmem:[#allocation2 + $0x70] sm:$0xff]  ;;  %v47_v49 = vld [vmem:[#allocation2 + $0x78] sm:$0xff]  ;;  %v222_v53 = vld [vmem:[%s375_s2] ss:$0 sm:$0xff] }
  0x1e   :  { %269 = vmatpush3.bf16.msra.mxu0 %v268_v19  ;;  %v288_v50 = vpack.c.bf16 %v47_v49, %v46_v48 }
  0x1f   :  { %271 = vmatprep.subr.bf16.mxu0 %v270_v20 }
  0x22   :  { %273 = vmatpush3.bf16.msra.mxu0 %v272_v25 }
  0x23   :  { %275 = vmatprep.subr.bf16.mxu0 %v274_v28 }
  0x26   :  { %277 = vmatpush3.bf16.msra.mxu0 %v276_v33 }
  0x27   :  { %279 = vmatprep.subr.bf16.mxu0 %v278_v35 }
  0x2a   :  { %281 = vmatpush3.bf16.msra.mxu0 %v280_v40 }
  0x2b   :  { %283 = vmatprep.subr.bf16.mxu0 %v282_v41 }
  0x2e   :  { %285 = vmatpush3.bf16.msra.mxu0 %v284_v46 }
  0x2f   :  { %287 = vmatprep.subr.bf16.mxu0 %v286_v47 }
  0x32   :  { %289 = vmatpush3.bf16.msra.mxu0 %v288_v50 }
  0x35   :  { %160 = vmatmul.mubr.f32.vlgmr.msra.gmra.mrb[0].mxu0 %v91_v51 }
 0x108   :  { %v255_v52 = vpop.f32.mrb[0].mxu0 }
 0x109   :  { %v256_v54 = vpop.f32.mrb[1].mxu0 }
 0x10a   :  { %v257_v55 = vadd.f32 %v256_v54, %v255_v52 }
 0x10c   :  { %v162_v56 = vadd.f32 %v257_v55, %v222_v53 }
 0x10e   :  { %v166_v57 = vand.u32 2147483647, %v162_v56  ;;  %v165_v4 = vmax.f32 %v162_v56, 0.0 }
 0x110   :  { %v167_v58 = vsub.f32 0.0, %v166_v57 }
 0x112   :  { %v168_v59 = vmul.f32 1.442695, %v167_v58 }
 0x114   :  { %296 = vpow2.f32 %v168_v59 }
 0x11e   :  { %v297_v60 = vpop.eup %296 }
 0x11f   :  { %v170_v61 = vadd.f32 1.0, %v297_v60  ;;  %v173_v62 = vmul.f32 -0.5, %v297_v60  ;;  %v176_v0 = vand.u32 2147483647, %v297_v60 }
 0x121   :  { %298 = vlog2.f32 %v170_v61  ;;  %v174_v63 = vadd.f32 1.0, %v173_v62  ;;  %vm177_vm0 = vcmp.lt.f32.partialorder %v176_v0, 0.0004427343 }
 0x123   :  { %v175_v3 = vmul.f32 %v297_v60, %v174_v63 }
 0x12b   :  { %v299_v1 = vpop.eup %298 }
 0x12c   :  { %v172_v2 = vmul.f32 0.6931472, %v299_v1 }
 0x12e   :  { %v178_v5 = vsel %vm177_vm0, %v175_v3, %v172_v2 }
 0x12f   :  { %v179_v6 = vadd.f32 %v178_v5, %v165_v4 }
 0x131   :  { %v180_v7 = vadd.f32 1e-06, %v179_v6 }
 0x133   :  { %181 = vst [vmem:[#allocation4] sm:$0xff] %v180_v7 }
 0x13a   :  { %v199_v8 = vld [vmem:[#allocation4] sm:$0x3] }
 0x13b   :  { %200 = vst [vmem:[%s376_s3] sm:$0x3] %v199_v8 }
 0x13c   :  { %217 = vsyncpa [#allocation3], 1 }

</bundles_post_ra>
